<compile_context>
chip_gen: v6e
topology: v6e:2x2x1
jax: 0.10.0
libtpu: 0.0.40
codegen_flags: <defaults>
</compile_context>

<pallas_src>
import math
import functools

import jax
import jax.numpy as jnp
from jax.experimental import pallas as pl
from jax.experimental.pallas import tpu as pltpu


# ----------------------------------------------------------------------------- kernel
def _fourier_res_kernel(x_ref, pos_ref, wcat_ref, ctb_ref, stb_ref, b_ref, o_ref):
    """Fused FourierResistor block for one (TB, T, H) batch slab.

    x_ref    : (TB, T, H)     f32   input slab (TB batch elements)
    pos_ref  : (T, H)         f32   sinusoidal positional encoding
    wcat_ref : (H, 2H)        bf16  [Ch@W | -(Sh@W)]   (projection + sign folded in)
    ctb_ref  : (TB*T, TB*T)   bf16  kron(I_TB, Ct)  block-diagonal time-DFT (cos)
    stb_ref  : (TB*T, TB*T)   bf16  kron(I_TB, St)  block-diagonal time-DFT (sin)
    b_ref    : (1, H)         f32   projection bias
    o_ref    : (TB, T, H)     f32   output slab
    """
    TB, T, H = x_ref.shape
    R = TB * T

    # x + positional encoding (dropout is identity at inference); residual kept in f32.
    # Collapse (TB, T, H) -> (TB*T, H): lane dim unchanged, only leading dims merge.
    h = (x_ref[...] + pos_ref[...]).reshape(R, H)

    # Hidden-axis DFT with the output projection folded in; both cos/sin branches
    # fused into a single bf16 MXU matmul over the batch-stacked rows.
    p = jnp.dot(h.astype(jnp.bfloat16), wcat_ref[...],
                preferred_element_type=jnp.float32)                       # (R, 2H) f32

    # Time-axis DFT applied per batch element via block-diagonal (kron) matrices so
    # the whole slab is two well-shaped MXU matmuls instead of TB tiny (T,T) ones.
    f = jnp.dot(ctb_ref[...], p[:, :H].astype(jnp.bfloat16),
                preferred_element_type=jnp.float32)                       # Ct h ChW
    f = f + jnp.dot(stb_ref[...], p[:, H:].astype(jnp.bfloat16),
                    preferred_element_type=jnp.float32)                   # - St h ShW

    # Residual + bias (f32 VPU math).
    y = h + f + b_ref[...]
    o_ref[...] = y.reshape(TB, T, H).astype(o_ref.dtype)


# --------------------------------------------------------------------------- helpers
def _position_encoding(time_dim: int, hidden_size: int) -> jnp.ndarray:
    """Matches TemporalEncoder.get_position_encoding for a single batch slice, (T, H)."""
    num_timescales = hidden_size // 2
    max_timescale, min_timescale = 10000.0, 1.0
    log_inc = math.log(max_timescale / min_timescale) / max(num_timescales - 1, 1)
    inv_timescales = min_timescale * jnp.exp(
        jnp.arange(num_timescales, dtype=jnp.float32) * -log_inc)
    position = jnp.arange(time_dim, dtype=jnp.float32)
    scaled_time = position[:, None] * inv_timescales[None, :]            # (T, H//2)
    signal = jnp.concatenate([jnp.sin(scaled_time), jnp.cos(scaled_time)], axis=1)
    pad = hidden_size % 2
    if pad:
        # NOTE: the reference F.pad pads the time dim for odd H (likely a bug);
        # we pad the hidden dim so shapes stay consistent.  Even H (normal case) is exact.
        signal = jnp.pad(signal, ((0, 0), (0, pad)))
    return signal                                                        # (T, H)


def _dft_matrices(n: int):
    k = jnp.arange(n, dtype=jnp.float32)
    ang = 2.0 * jnp.pi * (k[:, None] * k[None, :]) / float(n)
    return jnp.cos(ang), jnp.sin(ang)


def _pick_batch_tile(batch: int, time_dim: int) -> int:
    """Largest divisor of `batch` keeping the stacked row count TB*T <= 256 (MXU M-dim)."""
    cap = max(1, 256 // max(time_dim, 1))
    tb = 1
    for d in range(1, batch + 1):
        if batch % d == 0 and d <= cap:
            tb = d
    return tb


def _vmem_limit_bytes(tb: int, t: int, h: int) -> int:
    """Explicit scoped-VMEM budget: blocks + temporaries, generous headroom."""
    r = tb * t
    f32b, bf16b = 4, 2
    est = (
        2 * 2 * tb * t * h * f32b        # x & out blocks (double-buffered pipeline)
        + 2 * t * h * f32b               # positional encoding (double-buffered)
        + 2 * h * (2 * h) * bf16b        # [ChW | -ShW]
        + 2 * 2 * r * r * bf16b          # kron(I,Ct), kron(I,St)
        + 2 * h * f32b                   # bias
        + 4 * r * h * f32b               # h / f / y temporaries
        + r * (2 * h) * (f32b + bf16b)   # p and its bf16 halves
    )
    # 3x headroom, clamped into [16 MiB, 64 MiB] (64 MiB = physical VMEM per core on v7x).
    return int(min(64 * 1024 * 1024, max(16 * 1024 * 1024, 3 * est)))


def _const_spec(shape) -> pl.BlockSpec:
    """BlockSpec for a grid-invariant operand (same block every step)."""
    zeros = (0,) * len(shape)
    return pl.BlockSpec(shape, lambda i: zeros)


# --------------------------------------------------------------------------- forward
@functools.partial(jax.jit, static_argnames=("num_nodes",))
def _temporal_encoder_impl(inputs, w_proj, b_proj, *, num_nodes):
    """inputs: (B, T, N, C) float32 -> (B, T, N, C)."""
    B, T, N, C = inputs.shape
    assert N == num_nodes
    H = N * C
    x = inputs.reshape(B, T, H).astype(jnp.float32)   # == inputs.reshape(batch, time, -1)

    TB = _pick_batch_tile(B, T)
    R = TB * T

    # Constant operands: computed once per call in XLA (one-time H^3 cost amortized
    # over the whole batch grid); DFT/weight matrices cast to bf16 for the MXU.
    pos = _position_encoding(T, H)                                       # (T, H) f32
    ct, st = _dft_matrices(T)                                            # (T, T)
    ch, sh = _dft_matrices(H)                                            # (H, H)
    # Fold the learned projection into the hidden-axis DFT and fuse both branches
    # (with the minus sign folded in) into one stacked weight:  [Ch@W | -(Sh@W)].
    wcat = jnp.concatenate([ch @ w_proj, -(sh @ w_proj)], axis=1).astype(jnp.bfloat16)
    eye_tb = jnp.eye(TB, dtype=jnp.float32)
    ctb = jnp.kron(eye_tb, ct).astype(jnp.bfloat16)                      # (R, R)
    stb = jnp.kron(eye_tb, st).astype(jnp.bfloat16)                      # (R, R)
    b2 = b_proj.reshape(1, H).astype(jnp.float32)

    out = pl.pallas_call(
        _fourier_res_kernel,
        out_shape=jax.ShapeDtypeStruct((B, T, H), jnp.float32),
        grid_spec=pltpu.PrefetchScalarGridSpec(
            num_scalar_prefetch=0,
            grid=(B // TB,),
            in_specs=[
                pl.BlockSpec((TB, T, H), lambda i: (i, 0, 0)),           # x (pipelined)
                _const_spec((T, H)),                                     # pos
                _const_spec((H, 2 * H)),                                 # [ChW | -ShW]
                _const_spec((R, R)),                                     # kron(I, Ct)
                _const_spec((R, R)),                                     # kron(I, St)
                _const_spec((1, H)),                                     # bias
            ],
            out_specs=pl.BlockSpec((TB, T, H), lambda i: (i, 0, 0)),
        ),
        compiler_params=pltpu.CompilerParams(
            dimension_semantics=("parallel",),
            vmem_limit_bytes=_vmem_limit_bytes(TB, T, H),
        ),
    )(x, pos, wcat, ctb, stb, b2)

    return out.reshape(B, T, N, C)


def temporal_encoder_forward(inputs, w_proj, b_proj, *, num_nodes):
    """TemporalEncoder forward: (B, T, N, C) -> (B, T, N, C)."""
    out = _temporal_encoder_impl(inputs, w_proj, b_proj, num_nodes=num_nodes)
    return jax.block_until_ready(out)


# ------------------------------------------------------------------------- reference
def _reference_forward(inputs, w_proj, b_proj):
    """Pure-JAX f32 reference of the same math (for validation only)."""
    B, T, N, C = inputs.shape
    H = N * C
    x = inputs.reshape(B, T, H).astype(jnp.float32)
    pos = _position_encoding(T, H)
    ct, st = _dft_matrices(T)
    ch, sh = _dft_matrices(H)
    h = x + pos[None]
    f = jnp.einsum("kt,bth->bkh", ct, h) @ ch - jnp.einsum("kt,bth->bkh", st, h) @ sh
    y = h + f @ w_proj + b_proj[None, None, :]
    return y.reshape(B, T, N, C)


# ------------------------------------------------------------------------------ main
if __name__ == "__main__":
    # Small shapes consistent with the module: hidden_size = num_nodes * channels.
    B, T, N, C = 2, 8, 4, 8
    H = N * C  # 32

    key = jax.random.PRNGKey(0)
    kx, kw = jax.random.split(key)
    x = jax.random.normal(kx, (B, T, N, C), dtype=jnp.float32)

    # Deterministic parameter init for the FourierResistor output projection.
    w_proj = 0.02 * jax.random.normal(kw, (H, H), dtype=jnp.float32)
    b_proj = jnp.zeros((H,), dtype=jnp.float32)

    y = temporal_encoder_forward(x, w_proj, b_proj, num_nodes=N)
    ref = _reference_forward(x, w_proj, b_proj)

    assert y.shape == (B, T, N, C), y.shape
    assert bool(jnp.all(jnp.isfinite(y)))
    rel_err = float(jnp.linalg.norm(y - ref) / (jnp.linalg.norm(ref) + 1e-6))
    assert rel_err < 5e-2, f"relative L2 error too large: {rel_err}"
    print("KERNEL_OK")
</pallas_src>

<mosaic_0001>
module attributes {stable_mosaic.version = 11 : i64} {
  func.func @_fourier_res_kernel(%arg0: i32, %arg1: memref<2x8x32xf32, #tpu.memory_space<vmem>>, %arg2: memref<8x32xf32, #tpu.memory_space<vmem>>, %arg3: memref<32x64xbf16, #tpu.memory_space<vmem>>, %arg4: memref<16x16xbf16, #tpu.memory_space<vmem>>, %arg5: memref<16x16xbf16, #tpu.memory_space<vmem>>, %arg6: memref<1x32xf32, #tpu.memory_space<vmem>>, %arg7: memref<2x8x32xf32, #tpu.memory_space<vmem>>) attributes {dimension_semantics = [#tpu.dimension_semantics<parallel>], iteration_bounds = array<i64: 1>, scalar_prefetch = 0 : i64, scratch_operands = 0 : i64, tpu.core_type = #tpu.core_type<tc>, window_params = [{transform_indices = @transform_0, window_bounds = array<i64: 2, 8, 32>}, {pipeline_mode = #tpu.pipeline_mode<synchronous>, transform_indices = @transform_1, window_bounds = array<i64: 8, 32>}, {pipeline_mode = #tpu.pipeline_mode<synchronous>, transform_indices = @transform_2, window_bounds = array<i64: 32, 64>}, {pipeline_mode = #tpu.pipeline_mode<synchronous>, transform_indices = @transform_3, window_bounds = array<i64: 16, 16>}, {pipeline_mode = #tpu.pipeline_mode<synchronous>, transform_indices = @transform_4, window_bounds = array<i64: 16, 16>}, {pipeline_mode = #tpu.pipeline_mode<synchronous>, transform_indices = @transform_5, window_bounds = array<i64: 1, 32>}, {transform_indices = @transform_6, window_bounds = array<i64: 2, 8, 32>}]} {
    %c0 = arith.constant 0 : index
    %c0_0 = arith.constant 0 : index
    %c0_1 = arith.constant 0 : index
    %0 = vector.load %arg1[%c0, %c0_0, %c0_1] : memref<2x8x32xf32, #tpu.memory_space<vmem>>, vector<2x8x32xf32>
    %c0_2 = arith.constant 0 : index
    %c0_3 = arith.constant 0 : index
    %1 = vector.load %arg2[%c0_2, %c0_3] : memref<8x32xf32, #tpu.memory_space<vmem>>, vector<8x32xf32>
    %2 = vector.shape_cast %1 : vector<8x32xf32> to vector<1x8x32xf32>
    %3 = vector.broadcast %2 : vector<1x8x32xf32> to vector<2x8x32xf32>
    %4 = arith.addf %0, %3 : vector<2x8x32xf32>
    %5 = vector.shape_cast %4 : vector<2x8x32xf32> to vector<16x32xf32>
    %6 = arith.truncf %5 : vector<16x32xf32> to vector<16x32xbf16>
    %c0_4 = arith.constant 0 : index
    %c0_5 = arith.constant 0 : index
    %7 = vector.load %arg3[%c0_4, %c0_5] : memref<32x64xbf16, #tpu.memory_space<vmem>>, vector<32x64xbf16>
    %cst = arith.constant dense<0.000000e+00> : vector<16x64xf32>
    %8 = tpu.matmul %6, %7, %cst {dimension_numbers = #tpu.dot_dimension_numbers<[1], [0], [0], [1], [0, 0, 1, 1], [], []>} : vector<16x32xbf16>, vector<32x64xbf16>, vector<16x64xf32> -> vector<16x64xf32>
    %c0_6 = arith.constant 0 : index
    %c0_7 = arith.constant 0 : index
    %9 = vector.load %arg4[%c0_6, %c0_7] : memref<16x16xbf16, #tpu.memory_space<vmem>>, vector<16x16xbf16>
    %10 = vector.extract_strided_slice %8 {offsets = [0, 0], sizes = [16, 32], strides = [1, 1]} : vector<16x64xf32> to vector<16x32xf32>
    %11 = arith.truncf %10 : vector<16x32xf32> to vector<16x32xbf16>
    %cst_8 = arith.constant dense<0.000000e+00> : vector<16x32xf32>
    %12 = tpu.matmul %9, %11, %cst_8 {dimension_numbers = #tpu.dot_dimension_numbers<[1], [0], [0], [1], [0, 0, 1, 1], [], []>} : vector<16x16xbf16>, vector<16x32xbf16>, vector<16x32xf32> -> vector<16x32xf32>
    %c0_9 = arith.constant 0 : index
    %c0_10 = arith.constant 0 : index
    %13 = vector.load %arg5[%c0_9, %c0_10] : memref<16x16xbf16, #tpu.memory_space<vmem>>, vector<16x16xbf16>
    %14 = vector.extract_strided_slice %8 {offsets = [0, 32], sizes = [16, 32], strides = [1, 1]} : vector<16x64xf32> to vector<16x32xf32>
    %15 = arith.truncf %14 : vector<16x32xf32> to vector<16x32xbf16>
    %cst_11 = arith.constant dense<0.000000e+00> : vector<16x32xf32>
    %16 = tpu.matmul %13, %15, %cst_11 {dimension_numbers = #tpu.dot_dimension_numbers<[1], [0], [0], [1], [0, 0, 1, 1], [], []>} : vector<16x16xbf16>, vector<16x32xbf16>, vector<16x32xf32> -> vector<16x32xf32>
    %17 = arith.addf %12, %16 : vector<16x32xf32>
    %18 = arith.addf %5, %17 : vector<16x32xf32>
    %c0_12 = arith.constant 0 : index
    %c0_13 = arith.constant 0 : index
    %19 = vector.load %arg6[%c0_12, %c0_13] : memref<1x32xf32, #tpu.memory_space<vmem>>, vector<1x32xf32>
    %20 = vector.broadcast %19 : vector<1x32xf32> to vector<16x32xf32>
    %21 = arith.addf %18, %20 : vector<16x32xf32>
    %22 = vector.shape_cast %21 : vector<16x32xf32> to vector<2x8x32xf32>
    %c0_14 = arith.constant 0 : index
    %c0_15 = arith.constant 0 : index
    %c0_16 = arith.constant 0 : index
    %23 = vector.load %arg7[%c0_14, %c0_15, %c0_16] : memref<2x8x32xf32, #tpu.memory_space<vmem>>, vector<2x8x32xf32>
    tpu.vector_store %arg7[%c0_14, %c0_15, %c0_16], %22 {strides = array<i32>} : memref<2x8x32xf32, #tpu.memory_space<vmem>>, vector<2x8x32xf32>,
    return
  }
  func.func @transform_0(%arg0: i32) -> (i32, i32, i32) {
    %c0_i32 = arith.constant 0 : i32
    %c0_i32_0 = arith.constant 0 : i32
    %c0_i32_1 = arith.constant 0 : i32
    return %arg0, %c0_i32, %c0_i32_0 : i32, i32, i32
  }
  func.func @transform_1(%arg0: i32) -> (i32, i32) {
    %c0_i32 = arith.constant 0 : i32
    %c0_i32_0 = arith.constant 0 : i32
    %c0_i32_1 = arith.constant 0 : i32
    return %c0_i32, %c0_i32_0 : i32, i32
  }
  func.func @transform_2(%arg0: i32) -> (i32, i32) {
    %c0_i32 = arith.constant 0 : i32
    %c0_i32_0 = arith.constant 0 : i32
    %c0_i32_1 = arith.constant 0 : i32
    return %c0_i32, %c0_i32_0 : i32, i32
  }
  func.func @transform_3(%arg0: i32) -> (i32, i32) {
    %c0_i32 = arith.constant 0 : i32
    %c0_i32_0 = arith.constant 0 : i32
    %c0_i32_1 = arith.constant 0 : i32
    return %c0_i32, %c0_i32_0 : i32, i32
  }
  func.func @transform_4(%arg0: i32) -> (i32, i32) {
    %c0_i32 = arith.constant 0 : i32
    %c0_i32_0 = arith.constant 0 : i32
    %c0_i32_1 = arith.constant 0 : i32
    return %c0_i32, %c0_i32_0 : i32, i32
  }
  func.func @transform_5(%arg0: i32) -> (i32, i32) {
    %c0_i32 = arith.constant 0 : i32
    %c0_i32_0 = arith.constant 0 : i32
    %c0_i32_1 = arith.constant 0 : i32
    return %c0_i32, %c0_i32_0 : i32, i32
  }
  func.func @transform_6(%arg0: i32) -> (i32, i32, i32) {
    %c0_i32 = arith.constant 0 : i32
    %c0_i32_0 = arith.constant 0 : i32
    %c0_i32_1 = arith.constant 0 : i32
    return %arg0, %c0_i32, %c0_i32_0 : i32, i32, i32
  }
}

</mosaic_0001>

<bundles_post_ra>
// kernel: _temporal_encoder_impl.1
= control target key start
LH: loop header
LB: loop body
LE: loop exit
PB: predicated region body
PF: predicated region fallthrough
CT: control target
= control target key end

     0   :  { %v258_v0 = vmov 0.0   ;;  %vm259_vm0 = vmmov 0   ;;  %vm46_vm1 = vcmask 261120   ;;  %vm105_vm2 = vcmask 130048   ;;  %s332_s2 = inlined_call_operand.vmem [shape: bf16[32,64], index: 2, kind: input, shape index: {}]   ;;  %s333_s0 = inlined_call_operand.vmem [shape: f32[2,8,32], index: 0, kind: input, shape index: {}]   ;;  %s334_s1 = inlined_call_operand.vmem [shape: f32[8,32], index: 1, kind: input, shape index: {}]   ;;  %s335_s4 = inlined_call_operand.vmem [shape: bf16[16,16], index: 4, kind: input, shape index: {}]   ;;  %s336_s3 = inlined_call_operand.vmem [shape: bf16[16,16], index: 3, kind: input, shape index: {}]   ;;  %s337_s5 = inlined_call_operand.vmem [shape: f32[1,32], index: 5, kind: input, shape index: {}]   ;;  %s338_s6 = inlined_call_operand.vmem [shape: f32[2,8,32], index: 6, kind: output, shape index: {}]  }
   0x1   :  { %231 = vmatprep.subr.bf16.mxu0 %v258_v0  ;;  %v254_v1 = vld [vmem:[%s332_s2 + $0x8] sm:$0xff]   ;;  %235 = vmatprep.mubr.msk.bf16.mxu0 %vm259_vm0, %v258_v0  ;;  %v255_v2 = vld [vmem:[%s332_s2] sm:$0xff]   ;;  %s260_s2 = smov 96  }
   0x2   :  { %239 = vmatprep.subr.bf16.mxu1 %v258_v0  ;;  %241 = vmatprep.mubr.msk.bf16.mxu1 %vm259_vm0, %v258_v0  ;;  %v24_v3 = vld [vmem:[%s333_s0] sm:$0xff]  ;;  %v25_v4 = vld [vmem:[%s333_s0 + $0x8] sm:$0xff] }
   0x3   :  { %232 = vmatpush3.bf16.msra.mxu0 %v254_v1  ;;  %v26_v5 = vld [vmem:[%s334_s1] sm:$0xff] }
   0x4   :  { %233 = vmatprep.subr.bf16.mxu0 %v258_v0  ;;  %v27_v6 = vadd.f32 %v26_v5, %v24_v3  ;;  %v28_v7 = vadd.f32 %v26_v5, %v25_v4  ;;  %v256_v15 = vld [vmem:[%s335_s4] sm:$0xff]  }
   0x5   :  { %v257_v16 = vld [vmem:[%s336_s3] sm:$0xff]  }
   0x6   :  { %v29_v8 = vpack.c.bf16 %v28_v7, %v27_v6  ;;  %v223_v23 = vld [vmem:[%s337_s5] ss:$0 sm:$0xff] }
   0x7   :  { %234 = vmatpush3.bf16.msra.mxu0 %v255_v2 }
   0xa   :  { %236 = vmatmul.mubr.msk.bf16.vlgmr.msra.gmra.mxu0 %vm46_vm1, %v29_v8 }
  0xca   :  { %v84_v9 = vpop.f32.mrf.mxu0 }
  0xcc   :  { %v237_v10 = vpop.f32.mrf.mxu0 }
  0xce   :  { %v87_v11 = vpop.f32.mrf.mxu0 }
  0xcf   :  { %v93_v12 = vpack.c.bf16 %v87_v11, %v84_v9 }
  0xd0   :  { %v238_v13 = vpop.f32.mrf.mxu0 }
  0xd1   :  { %102 = vrot.lane.b32.xlu0 %v93_v12, %s260_s2 }
 0x143   :  { %v103_v14 = vpop.permute.xlu0 %102 }
 0x144   :  { %240 = vmatpush3.bf16.msra.mxu1 %v103_v14 }
 0x145   :  { %245 = vmatprep.subr.bf16.mxu1 %v258_v0 }
 0x147   :  { %242 = vmatmul.mubr.msk.bf16.vlgmr.msra.gmra.mxu1 %vm105_vm2, %v256_v15 }
 0x148   :  { %246 = vmatpush3.bf16.msra.mxu1 %v93_v12  ;;  %247 = vmatprep.mubr.msk.bf16.mxu1 %vm259_vm0, %v258_v0 }
 0x14f   :  { %248 = vmatmul.mubr.msk.bf16.vlgmr.msra.gmra.mxu1 %vm105_vm2, %v257_v16 }
 0x207   :  { %v143_v17 = vpop.f32.mrf.mxu1 }
 0x209   :  { %v243_v18 = vpop.f32.mrf.mxu1 }
 0x20b   :  { %v146_v19 = vpop.f32.mrf.mxu1 }
 0x20d   :  { %v244_v20 = vpop.f32.mrf.mxu1 }
 0x20f   :  { %v192_v21 = vpop.f32.mrf.mxu1 }
 0x210   :  { %v193_v22 = vadd.f32 %v192_v21, %v143_v17 }
 0x211   :  { %v249_v24 = vpop.f32.mrf.mxu1 }
 0x212   :  { %v199_v25 = vadd.f32 %v193_v22, %v27_v6 }
 0x213   :  { %v195_v26 = vpop.f32.mrf.mxu1 }
 0x214   :  { %v208_v27 = vadd.f32 %v223_v23, %v199_v25  ;;  %v196_v28 = vadd.f32 %v195_v26, %v146_v19 }
 0x215   :  { %v250_v29 = vpop.f32.mrf.mxu1 }
 0x216   :  { %210 = vst.msk [vmem:[%s338_s6] sm:$0xff] %vm46_vm1, %v208_v27  ;;  %v200_v30 = vadd.f32 %v196_v28, %v28_v7 }
 0x218   :  { %v209_v31 = vadd.f32 %v223_v23, %v200_v30 }
 0x21a   :  { %211 = vst.msk [vmem:[%s338_s6 + $0x8] sm:$0xff] %vm46_vm1, %v209_v31 }

</bundles_post_ra>
